<compile_context>
chip_gen: v5e
topology: v5e:2x2
jax: 0.10.0
libtpu: 0.0.40
codegen_flags: <defaults>
</compile_context>

<pallas_src>
import functools

import jax
import jax.numpy as jnp
from jax import lax
from jax.experimental import pallas as pl
from jax.experimental.pallas import tpu as pltpu

N_LAYERS = 1
LN_EPS = 1e-5
MXU_INPUT_DTYPE = jnp.bfloat16          # MXU input dtype (f32 accumulation everywhere)
VMEM_LIMIT = 32 * 1024 * 1024           # conservative: fits v7x's 64 MiB VMEM with headroom
TM_PREF, TN_PREF, TK_PREF = 256, 256, 512   # 256-wide tiles for v6e/v7x MXU (v5e splits internally)


def _round_up(x, m):
    return (x + m - 1) // m * m


def _pick_tile(dim, preferred, align):
    """Largest tile <= preferred that is a multiple of `align` and divides `dim`
    (falls back to the full dim, which is always a legal full-extent block)."""
    if dim <= preferred:
        return dim
    t = (preferred // align) * align
    while t >= align:
        if dim % t == 0:
            return t
        t -= align
    return dim


# --------------------------------------------------------------------------
# Tiled matmul (MXU) with K-axis accumulator
# --------------------------------------------------------------------------

def _matmul_kernel(x_ref, w_ref, o_ref, acc_ref):
    @pl.when(pl.program_id(2) == 0)
    def _init():
        acc_ref[...] = jnp.zeros_like(acc_ref)

    acc_ref[...] += jnp.dot(
        x_ref[...].astype(MXU_INPUT_DTYPE),
        w_ref[...].astype(MXU_INPUT_DTYPE),
        preferred_element_type=jnp.float32)

    @pl.when(pl.program_id(2) == pl.num_programs(2) - 1)
    def _store():
        o_ref[...] = acc_ref[...]


def pl_matmul(x, w):
    """x: [M, K] f32, w: [K, N] f32 -> [M, N] f32. Lane dim padded to 128 for dense stores."""
    M, K = x.shape
    K2, N = w.shape
    assert K == K2
    Mp = _round_up(M, 8)
    Np = _round_up(N, 128)
    x_p = jnp.pad(x, ((0, Mp - M), (0, 0))) if Mp != M else x
    w_p = jnp.pad(w, ((0, 0), (0, Np - N))) if Np != N else w

    tm = _pick_tile(Mp, TM_PREF, 8)
    tn = _pick_tile(Np, TN_PREF, 128)
    tk = _pick_tile(K, TK_PREF, 128)

    out = pl.pallas_call(
        _matmul_kernel,
        out_shape=jax.ShapeDtypeStruct((Mp, Np), jnp.float32),
        grid=(Mp // tm, Np // tn, K // tk),
        in_specs=[pl.BlockSpec((tm, tk), lambda i, j, k: (i, k)),
                  pl.BlockSpec((tk, tn), lambda i, j, k: (k, j))],
        out_specs=pl.BlockSpec((tm, tn), lambda i, j, k: (i, j)),
        scratch_shapes=[pltpu.VMEM((tm, tn), jnp.float32)],
        compiler_params=pltpu.CompilerParams(
            dimension_semantics=("parallel", "parallel", "arbitrary"),
            vmem_limit_bytes=VMEM_LIMIT),
    )(x_p, w_p)

    if Mp != M or Np != N:
        out = out[:M, :N]
    return out


# --------------------------------------------------------------------------
# Fused multi-head attention core: all heads of one batch element per grid step
# --------------------------------------------------------------------------

def _attention_kernel(inv_sqrt_dk, n_heads, d_k, d_v,
                      q_ref, kv_ref, m_ref, ctx_ref, attn_ref):
    mask = m_ref[0] != 0                       # [Lq, Lk] bool (reused across heads)
    q_all = q_ref[0]                           # [Lq, H*dk]
    kv_all = kv_ref[0]                         # [Lk, H*dk + H*dv]
    k_all = kv_all[:, :n_heads * d_k]
    v_all = kv_all[:, n_heads * d_k:]

    ctx_parts = []
    for h in range(n_heads):                   # static unrolled loop over heads
        q_h = q_all[:, h * d_k:(h + 1) * d_k].astype(MXU_INPUT_DTYPE)
        k_h = k_all[:, h * d_k:(h + 1) * d_k].astype(MXU_INPUT_DTYPE)
        v_h = v_all[:, h * d_v:(h + 1) * d_v].astype(MXU_INPUT_DTYPE)
        # contract on the last dim of both (no explicit k.T transpose)
        s = lax.dot_general(q_h, k_h, (((1,), (1,)), ((), ())),
                            preferred_element_type=jnp.float32) * inv_sqrt_dk
        # matches torch masked_fill_(attn_mask, -1e9)
        s = jnp.where(mask, jnp.float32(-1e9), s)
        mx = jnp.max(s, axis=-1, keepdims=True)
        e = jnp.exp(s - mx)
        p = e * pl.reciprocal(jnp.sum(e, axis=-1, keepdims=True), approx=True)
        attn_ref[0, h] = p                     # returned by the module, so kept on hot path
        ctx_parts.append(jnp.dot(p.astype(MXU_INPUT_DTYPE), v_h,
                                 preferred_element_type=jnp.float32))
    ctx_ref[0] = jnp.concatenate(ctx_parts, axis=-1)   # single dense [Lq, H*dv] store


def pl_attention(q, kv, mask, cfg):
    """q: [B, Lq, H*dk], kv: [B, Lk, H*dk + H*dv], mask: [B, Lq, Lk] int32 (nonzero = masked).
    Returns ctx [B, Lq, H*dv] and attn [B, H, Lq, Lk]."""
    B, Lq, Hdk = q.shape
    _, Lk, Hdkv = kv.shape
    H, d_k, d_v = cfg["n_heads"], cfg["d_k"], cfg["d_v"]
    kernel = functools.partial(_attention_kernel, 1.0 / (float(d_k) ** 0.5), H, d_k, d_v)
    ctx, attn = pl.pallas_call(
        kernel,
        out_shape=(jax.ShapeDtypeStruct((B, Lq, H * d_v), jnp.float32),
                   jax.ShapeDtypeStruct((B, H, Lq, Lk), jnp.float32)),
        grid=(B,),
        in_specs=[pl.BlockSpec((1, Lq, Hdk), lambda b: (b, 0, 0)),
                  pl.BlockSpec((1, Lk, Hdkv), lambda b: (b, 0, 0)),
                  pl.BlockSpec((1, Lq, Lk), lambda b: (b, 0, 0))],
        out_specs=(pl.BlockSpec((1, Lq, H * d_v), lambda b: (b, 0, 0)),
                   pl.BlockSpec((1, H, Lq, Lk), lambda b: (b, 0, 0, 0))),
        compiler_params=pltpu.CompilerParams(
            dimension_semantics=("parallel",),
            vmem_limit_bytes=VMEM_LIMIT),
    )(q, kv, mask)
    return ctx, attn


# --------------------------------------------------------------------------
# Fused output-projection + residual add + LayerNorm (row-tiled)
# --------------------------------------------------------------------------

def _proj_add_ln_kernel(ctx_ref, wo_ref, res_ref, g_ref, b_ref, o_ref):
    y = jnp.dot(ctx_ref[...].astype(MXU_INPUT_DTYPE),
                wo_ref[...].astype(MXU_INPUT_DTYPE),
                preferred_element_type=jnp.float32) + res_ref[...]
    mu = jnp.mean(y, axis=-1, keepdims=True)
    var = jnp.mean((y - mu) ** 2, axis=-1, keepdims=True)
    o_ref[...] = (y - mu) * lax.rsqrt(var + LN_EPS) * g_ref[...] + b_ref[...]


def pl_proj_add_ln(ctx, wo, residual, gamma, beta):
    M, Hdv = ctx.shape
    _, D = wo.shape
    tm = _pick_tile(M, TM_PREF, 8)
    return pl.pallas_call(
        _proj_add_ln_kernel,
        out_shape=jax.ShapeDtypeStruct((M, D), jnp.float32),
        grid=(M // tm,),
        in_specs=[pl.BlockSpec((tm, Hdv), lambda i: (i, 0)),
                  pl.BlockSpec((Hdv, D), lambda i: (0, 0)),
                  pl.BlockSpec((tm, D), lambda i: (i, 0)),
                  pl.BlockSpec((1, D), lambda i: (0, 0)),
                  pl.BlockSpec((1, D), lambda i: (0, 0))],
        out_specs=pl.BlockSpec((tm, D), lambda i: (i, 0)),
        compiler_params=pltpu.CompilerParams(
            dimension_semantics=("parallel",),
            vmem_limit_bytes=VMEM_LIMIT),
    )(ctx, wo, residual, gamma, beta)


# --------------------------------------------------------------------------
# Fused position-wise FFN + residual add + LayerNorm (row-tiled)
# --------------------------------------------------------------------------

def _ffn_add_ln_kernel(x_ref, w1_ref, w2_ref, g_ref, b_ref, o_ref):
    x = x_ref[...]
    h = jnp.maximum(
        jnp.dot(x.astype(MXU_INPUT_DTYPE), w1_ref[...].astype(MXU_INPUT_DTYPE),
                preferred_element_type=jnp.float32), 0.0)
    y = jnp.dot(h.astype(MXU_INPUT_DTYPE), w2_ref[...].astype(MXU_INPUT_DTYPE),
                preferred_element_type=jnp.float32) + x
    mu = jnp.mean(y, axis=-1, keepdims=True)
    var = jnp.mean((y - mu) ** 2, axis=-1, keepdims=True)
    o_ref[...] = (y - mu) * lax.rsqrt(var + LN_EPS) * g_ref[...] + b_ref[...]


def pl_ffn_add_ln(x, w1, w2, gamma, beta):
    M, D = x.shape
    _, F = w1.shape
    tm = _pick_tile(M, TM_PREF, 8)
    return pl.pallas_call(
        _ffn_add_ln_kernel,
        out_shape=jax.ShapeDtypeStruct((M, D), jnp.float32),
        grid=(M // tm,),
        in_specs=[pl.BlockSpec((tm, D), lambda i: (i, 0)),
                  pl.BlockSpec((D, F), lambda i: (0, 0)),
                  pl.BlockSpec((F, D), lambda i: (0, 0)),
                  pl.BlockSpec((1, D), lambda i: (0, 0)),
                  pl.BlockSpec((1, D), lambda i: (0, 0))],
        out_specs=pl.BlockSpec((tm, D), lambda i: (i, 0)),
        compiler_params=pltpu.CompilerParams(
            dimension_semantics=("parallel",),
            vmem_limit_bytes=VMEM_LIMIT),
    )(x, w1, w2, gamma, beta)


# --------------------------------------------------------------------------
# Plain-JAX glue (embedding gather, positional encoding, masks, reshapes)
# --------------------------------------------------------------------------
# TODO(synk): embedding gather and sinusoidal positional-encoding add stay in plain JAX glue.

def positional_encoding(L, d_model):
    pos = jnp.arange(L, dtype=jnp.float32)[:, None]
    i = jnp.arange(d_model, dtype=jnp.float32)[None, :]
    angle = pos / jnp.power(10000.0, (2.0 * jnp.floor(i / 2.0)) / d_model)
    even = (jnp.arange(d_model)[None, :] % 2) == 0
    return jnp.where(even, jnp.sin(angle), jnp.cos(angle))  # [L, d_model]


def get_attn_pad_mask(seq_q, seq_k):
    B, Lq = seq_q.shape
    Lk = seq_k.shape[1]
    pad = (seq_k == 0)[:, None, :]                 # [B, 1, Lk]
    return jnp.broadcast_to(pad, (B, Lq, Lk))


def get_attn_subsequence_mask(seq):
    B, L = seq.shape
    m = jnp.triu(jnp.ones((L, L), dtype=bool), k=1)
    return jnp.broadcast_to(m[None], (B, L, L))


def multi_head_attention(p, x_q, x_kv, attn_mask, cfg):
    H, d_k, d_v, D = cfg["n_heads"], cfg["d_k"], cfg["d_v"], cfg["d_model"]
    B, Lq, _ = x_q.shape
    Lk = x_kv.shape[1]
    xq_flat = x_q.reshape(B * Lq, D)

    if x_q is x_kv:
        # self-attention: single fused Q|K|V projection
        qkv = pl_matmul(xq_flat, p["w_qkv"])                     # [B*Lq, H*dk + H*dk + H*dv]
        q = qkv[:, :H * d_k].reshape(B, Lq, H * d_k)
        kv = qkv[:, H * d_k:].reshape(B, Lk, H * d_k + H * d_v)
    else:
        # cross-attention: Q from decoder state, fused K|V from encoder output
        q = pl_matmul(xq_flat, p["w_qkv"][:, :H * d_k]).reshape(B, Lq, H * d_k)
        kv = pl_matmul(x_kv.reshape(B * Lk, D),
                       p["w_qkv"][:, H * d_k:]).reshape(B, Lk, H * d_k + H * d_v)

    mask = attn_mask.astype(jnp.int32)                           # [B, Lq, Lk], reused per head
    ctx, attn = pl_attention(q, kv, mask, cfg)                   # ctx [B, Lq, H*dv]

    out = pl_proj_add_ln(ctx.reshape(B * Lq, H * d_v), p["wo"], xq_flat,
                         p["ln_g"], p["ln_b"])
    return out.reshape(B, Lq, D), attn                           # attn [B, H, Lq, Lk]


def poswise_ffn(p, x):
    B, L, D = x.shape
    flat = x.reshape(B * L, D)
    out = pl_ffn_add_ln(flat, p["w1"], p["w2"], p["ln_g"], p["ln_b"])
    return out.reshape(B, L, D)


def encoder(params, enc_inputs, cfg):
    B, L = enc_inputs.shape
    x = params["src_emb"][enc_inputs]                            # [B, L, d_model]
    x = x + positional_encoding(L, cfg["d_model"])[None, :, :]
    self_mask = get_attn_pad_mask(enc_inputs, enc_inputs)
    attns = []
    for lp in params["enc_layers"]:
        x, a = multi_head_attention(lp["mha"], x, x, self_mask, cfg)
        x = poswise_ffn(lp["ffn"], x)
        attns.append(a)
    return x, attns


def decoder(params, dec_inputs, enc_inputs, enc_outputs, cfg):
    B, L = dec_inputs.shape
    x = params["tgt_emb"][dec_inputs]
    x = x + positional_encoding(L, cfg["d_model"])[None, :, :]
    self_mask = get_attn_pad_mask(dec_inputs, dec_inputs) | get_attn_subsequence_mask(dec_inputs)
    cross_mask = get_attn_pad_mask(dec_inputs, enc_inputs)
    self_attns, cross_attns = [], []
    for lp in params["dec_layers"]:
        x, sa = multi_head_attention(lp["self_mha"], x, x, self_mask, cfg)
        x, ca = multi_head_attention(lp["cross_mha"], x, enc_outputs, cross_mask, cfg)
        x = poswise_ffn(lp["ffn"], x)
        self_attns.append(sa)
        cross_attns.append(ca)
    return x, self_attns, cross_attns


def transformer_forward(params, enc_inputs, dec_inputs, cfg):
    enc_out, enc_self_attns = encoder(params, enc_inputs, cfg)
    dec_out, dec_self_attns, dec_enc_attns = decoder(params, dec_inputs, enc_inputs, enc_out, cfg)
    B, Lt, D = dec_out.shape
    dec_logits = pl_matmul(dec_out.reshape(B * Lt, D), params["proj"])   # [B*tgt_len, tgt_vocab]
    return dec_logits, enc_self_attns, dec_self_attns, dec_enc_attns


# --------------------------------------------------------------------------
# Deterministic parameter init (shapes as implied by the nn.Module __init__)
# --------------------------------------------------------------------------

def _linear_w(key, in_f, out_f):
    # nn.Linear(in_f, out_f, bias=False).weight is [out_f, in_f]; stored transposed for x @ W.
    bound = 1.0 / (in_f ** 0.5)
    return jax.random.uniform(key, (in_f, out_f), jnp.float32, -bound, bound)


def _mha_params(key, cfg):
    D, H, d_k, d_v = cfg["d_model"], cfg["n_heads"], cfg["d_k"], cfg["d_v"]
    k1, k2 = jax.random.split(key, 2)
    return {
        # fused [wq | wk | wv]: all three share in_features = d_model
        "w_qkv": _linear_w(k1, D, H * d_k + H * d_k + H * d_v),
        "wo": _linear_w(k2, H * d_v, D),
        "ln_g": jnp.ones((1, D), jnp.float32),
        "ln_b": jnp.zeros((1, D), jnp.float32),
    }


def _ffn_params(key, cfg):
    D, F = cfg["d_model"], cfg["d_ff"]
    k1, k2 = jax.random.split(key, 2)
    return {
        "w1": _linear_w(k1, D, F),
        "w2": _linear_w(k2, F, D),
        "ln_g": jnp.ones((1, D), jnp.float32),
        "ln_b": jnp.zeros((1, D), jnp.float32),
    }


def init_params(key, cfg):
    keys = jax.random.split(key, 4 + 2 * N_LAYERS + 3 * N_LAYERS)
    it = iter(keys)
    params = {
        "src_emb": jax.random.normal(next(it), (cfg["src_vocab"], cfg["d_model"]), jnp.float32),
        "tgt_emb": jax.random.normal(next(it), (cfg["tgt_vocab"], cfg["d_model"]), jnp.float32),
        "proj": _linear_w(next(it), cfg["d_model"], cfg["tgt_vocab"]),
        "enc_layers": [],
        "dec_layers": [],
    }
    for _ in range(N_LAYERS):
        params["enc_layers"].append({"mha": _mha_params(next(it), cfg),
                                     "ffn": _ffn_params(next(it), cfg)})
    for _ in range(N_LAYERS):
        params["dec_layers"].append({"self_mha": _mha_params(next(it), cfg),
                                     "cross_mha": _mha_params(next(it), cfg),
                                     "ffn": _ffn_params(next(it), cfg)})
    return params


if __name__ == "__main__":
    cfg = dict(src_vocab=11, tgt_vocab=9, d_model=32, n_heads=4, d_k=8, d_v=8, d_ff=64)
    B, src_len, tgt_len = 2, 8, 8

    key = jax.random.PRNGKey(0)
    kp, ke, kd = jax.random.split(key, 3)
    params = init_params(kp, cfg)

    enc_inputs = jax.random.randint(ke, (B, src_len), 0, cfg["src_vocab"], dtype=jnp.int32)
    dec_inputs = jax.random.randint(kd, (B, tgt_len), 0, cfg["tgt_vocab"], dtype=jnp.int32)

    dec_logits, enc_self_attns, dec_self_attns, dec_enc_attns = transformer_forward(
        params, enc_inputs, dec_inputs, cfg)

    jax.block_until_ready(dec_logits)
    jax.tree_util.tree_map(jax.block_until_ready,
                           (enc_self_attns, dec_self_attns, dec_enc_attns))

    assert dec_logits.shape == (B * tgt_len, cfg["tgt_vocab"])
    assert enc_self_attns[0].shape == (B, cfg["n_heads"], src_len, src_len)
    assert dec_self_attns[0].shape == (B, cfg["n_heads"], tgt_len, tgt_len)
    assert dec_enc_attns[0].shape == (B, cfg["n_heads"], tgt_len, src_len)
    print("KERNEL_OK")
</pallas_src>

<mosaic_0001>
module attributes {stable_mosaic.version = 11 : i64} {
  func.func @_matmul_kernel(%arg0: i32, %arg1: i32, %arg2: i32, %arg3: memref<16x32xf32, #tpu.memory_space<vmem>>, %arg4: memref<32x128xf32, #tpu.memory_space<vmem>>, %arg5: memref<16x128xf32, #tpu.memory_space<vmem>>, %arg6: memref<16x128xf32, #tpu.memory_space<vmem>>) attributes {dimension_semantics = [#tpu.dimension_semantics<parallel>, #tpu.dimension_semantics<parallel>, #tpu.dimension_semantics<arbitrary>], iteration_bounds = array<i64: 1, 1, 1>, scalar_prefetch = 0 : i64, scratch_operands = 1 : i64, tpu.core_type = #tpu.core_type<tc>, window_params = [{transform_indices = @transform_0, window_bounds = array<i64: 16, 32>}, {transform_indices = @transform_1, window_bounds = array<i64: 32, 128>}, {transform_indices = @transform_2, window_bounds = array<i64: 16, 128>}]} {
    %c0_i32 = arith.constant 0 : i32
    %0 = arith.cmpi eq, %arg2, %c0_i32 : i32
    %1 = arith.extui %0 : i1 to i32
    %c0_i32_0 = arith.constant 0 : i32
    %2 = arith.cmpi ne, %1, %c0_i32_0 : i32
    scf.if %2 {
      %cst_10 = arith.constant 0.000000e+00 : f32
      %14 = vector.broadcast %cst_10 : f32 to vector<16x128xf32>
      %c0_11 = arith.constant 0 : index
      %c0_12 = arith.constant 0 : index
      %15 = vector.load %arg6[%c0_11, %c0_12] : memref<16x128xf32, #tpu.memory_space<vmem>>, vector<16x128xf32>
      tpu.vector_store %arg6[%c0_11, %c0_12], %14 {strides = array<i32>} : memref<16x128xf32, #tpu.memory_space<vmem>>, vector<16x128xf32>,
    } else {
    }
    %c0 = arith.constant 0 : index
    %c0_1 = arith.constant 0 : index
    %3 = vector.load %arg6[%c0, %c0_1] : memref<16x128xf32, #tpu.memory_space<vmem>>, vector<16x128xf32>
    %c0_2 = arith.constant 0 : index
    %c0_3 = arith.constant 0 : index
    %4 = vector.load %arg3[%c0_2, %c0_3] : memref<16x32xf32, #tpu.memory_space<vmem>>, vector<16x32xf32>
    %5 = arith.truncf %4 : vector<16x32xf32> to vector<16x32xbf16>
    %c0_4 = arith.constant 0 : index
    %c0_5 = arith.constant 0 : index
    %6 = vector.load %arg4[%c0_4, %c0_5] : memref<32x128xf32, #tpu.memory_space<vmem>>, vector<32x128xf32>
    %7 = arith.truncf %6 : vector<32x128xf32> to vector<32x128xbf16>
    %cst = arith.constant dense<0.000000e+00> : vector<16x128xf32>
    %8 = tpu.matmul %5, %7, %cst {dimension_numbers = #tpu.dot_dimension_numbers<[1], [0], [0], [1], [0, 0, 1, 1], [], []>} : vector<16x32xbf16>, vector<32x128xbf16>, vector<16x128xf32> -> vector<16x128xf32>
    %9 = arith.addf %3, %8 : vector<16x128xf32>
    %c0_6 = arith.constant 0 : index
    %c0_7 = arith.constant 0 : index
    %10 = vector.load %arg6[%c0_6, %c0_7] : memref<16x128xf32, #tpu.memory_space<vmem>>, vector<16x128xf32>
    tpu.vector_store %arg6[%c0_6, %c0_7], %9 {strides = array<i32>} : memref<16x128xf32, #tpu.memory_space<vmem>>, vector<16x128xf32>,
    %c0_i32_8 = arith.constant 0 : i32
    %11 = arith.cmpi eq, %arg2, %c0_i32_8 : i32
    %12 = arith.extui %11 : i1 to i32
    %c0_i32_9 = arith.constant 0 : i32
    %13 = arith.cmpi ne, %12, %c0_i32_9 : i32
    scf.if %13 {
      %c0_10 = arith.constant 0 : index
      %c0_11 = arith.constant 0 : index
      %14 = vector.load %arg6[%c0_10, %c0_11] : memref<16x128xf32, #tpu.memory_space<vmem>>, vector<16x128xf32>
      %c0_12 = arith.constant 0 : index
      %c0_13 = arith.constant 0 : index
      %15 = vector.load %arg5[%c0_12, %c0_13] : memref<16x128xf32, #tpu.memory_space<vmem>>, vector<16x128xf32>
      tpu.vector_store %arg5[%c0_12, %c0_13], %14 {strides = array<i32>} : memref<16x128xf32, #tpu.memory_space<vmem>>, vector<16x128xf32>,
    } else {
    }
    return
  }
  func.func @transform_0(%arg0: i32, %arg1: i32, %arg2: i32) -> (i32, i32) {
    %c0_i32 = arith.constant 0 : i32
    return %arg0, %arg2 : i32, i32
  }
  func.func @transform_1(%arg0: i32, %arg1: i32, %arg2: i32) -> (i32, i32) {
    %c0_i32 = arith.constant 0 : i32
    return %arg2, %arg1 : i32, i32
  }
  func.func @transform_2(%arg0: i32, %arg1: i32, %arg2: i32) -> (i32, i32) {
    %c0_i32 = arith.constant 0 : i32
    return %arg0, %arg1 : i32, i32
  }
}

</mosaic_0001>

<bundles_post_ra>
// kernel: tpu_custom_call.1
= control target key start
LH: loop header
LB: loop body
LE: loop exit
PB: predicated region body
PF: predicated region fallthrough
CT: control target
= control target key end

     0   :  { %7 = vsyncpa [#allocation4], 0  ;;  %s233_s0 = inlined_call_operand.hbm [shape: f32[16,32], index: 0, kind: input, shape index: {}]   ;;  %s234_s1 = inlined_call_operand.hbm [shape: f32[32,128], index: 1, kind: input, shape index: {}]   ;;  %s235_s2 = inlined_call_operand.hbm [shape: f32[16,128], index: 2, kind: output, shape index: {}]  }
   0x1   :  { %8 = vsyncpa [#allocation7], 0 }
   0x2   :  { %9 = vsyncpa [#allocation5], 0  ;;  %s14_s11 = sshll.u32 %s233_s0, 4  ;;  %s195_s12 = smov [#allocation3]   ;;  %s15_s11 = int_to_ptr.hbm [resolvable:$true] %s14_s11 }
   0x3   :  { %s16_s13 = sshll.u32 %s195_s12, 4  ;;  %s27_s16 = sshll.u32 %s234_s1, 4  ;;  %s17_s13 = int_to_ptr.vmem [resolvable:$true] %s16_s13  ;;  %s28_s16 = int_to_ptr.hbm [resolvable:$true] %s27_s16 }
   0x4   :  { %s196_s17 = smov 128   ;;  %s197_s18 = smov 8  }
   0x5   :  { %22 = dma.hbm_to_vmem [thread:$0]  %s15_s11, 256, %s17_s13, [#allocation4], %s196_s17, %s196_s17, %s197_s18  }
   0x6   :  { %s198_s19 = smov [#allocation6]  }
   0x7   :  { %s29_s20 = sshll.u32 %s198_s19, 4  ;;  %s30_s20 = int_to_ptr.vmem [resolvable:$true] %s29_s20 }
   0x8   :  { %35 = dma.hbm_to_vmem [thread:$0]  %s28_s16, 512, %s30_s20, [#allocation7], %s196_s17, %s196_s17, %s197_s18  }
   0x9   :  { %189 = dma.done.wait [#allocation4], 256  }
   0xa   :  { %190 = vsyncadd [#allocation4], 4294967040 }
   0xb   :  { %191 = dma.done.wait [#allocation7], 512  }
   0xc   :  { %192 = vsyncadd [#allocation7], 4294966784  ;;  %v58_v0 = vld [vmem:[#allocation6 + $0x10] sm:$0xff]  ;;  %v59_v1 = vld [vmem:[#allocation6 + $0x18] sm:$0xff]  ;;  %vm62_vm0 = vcmask 261120   ;;  %s199_s0 = smov [#allocation8]  }
   0xd   :  { %v56_v2 = vld [vmem:[#allocation6] sm:$0xff]  ;;  %v61_v3 = vpack.c.bf16 %v59_v1, %v58_v0  ;;  %v57_v4 = vld [vmem:[#allocation6 + $0x8] sm:$0xff]  ;;  %v53_v6 = vld [vmem:[#allocation3] sm:$0xff]  ;;  %s95_s1 = sshll.u32 %s199_s0, 4  ;;  %s97_s23 = sshll.u32 %s235_s2, 4  ;;  %s96_s1 = int_to_ptr.vmem [resolvable:$true] %s95_s1  ;;  %s98_s23 = int_to_ptr.hbm [resolvable:$true] %s97_s23 }
   0xe   :  { %v60_v5 = vpack.c.bf16 %v57_v4, %v56_v2  ;;  %v54_v7 = vld [vmem:[#allocation3 + $0x8] sm:$0xff] }
   0xf   :  { %72 = vmatpush.bf16.msra.mxu0 %v61_v3  ;;  %v55_v8 = vpack.c.bf16 %v54_v7, %v53_v6 }
  0x13   :  { %73 = vmatpush.bf16.msra.mxu0 %v60_v5 }
  0x16   :  { %111 = vmatmul.msk.bf16.vlgmr.msra.gmra.mxu0 %vm62_vm0, %v55_v8 }
  0x93   :  { %v75_v9 = vpop.f32.mrf.mxu0 }
  0x94   :  { %89 = vst [vmem:[#allocation8] sm:$0xff] %v75_v9 }
  0x9b   :  { %v77_v10 = vpop.f32.mrf.mxu0 }
  0x9c   :  { %90 = vst [vmem:[#allocation8 + $0x8] sm:$0xff] %v77_v10 }
  0x9d   :  { %103 = dma.vmem_to_hbm [thread:$0]  %s96_s1, 256, %s98_s23, [#allocation5], %s196_s17, %s196_s17, %s197_s18  }
  0x9e   :  { %193 = dma.done.wait [#allocation5], 256  }
  0x9f   :  { %194 = vsyncadd [#allocation5], 4294967040 }
  0xa0   :  { %108 = vsyncpa [#allocation4], 1 }
  0xa1   :  { %109 = vsyncpa [#allocation7], 1 }
  0xa2   :  { %110 = vsyncpa [#allocation5], 1 }

</bundles_post_ra>
